<compile_context>
chip_gen: v7x
topology: tpu7x:2x2x1
jax: 0.10.0
libtpu: 0.0.40
codegen_flags: <defaults>
</compile_context>

<pallas_src>
import functools

import numpy as np
import jax
import jax.numpy as jnp
from jax.experimental import pallas as pl
from jax.experimental.pallas import tpu as pltpu


def _round_up(x, m):
    return (x + m - 1) // m * m


def _pad_and_tile(size, align, cap):
    """Return (padded_size, tile) with tile | padded_size; cap % align == 0."""
    if size <= cap:
        p = _round_up(size, align)
        return p, p
    p = _round_up(size, cap)
    return p, cap


# ----------------------------- Pallas kernels ------------------------------

def me_kernel(xaug_ref, w_ref, out_ref):
    """ME gated projection as one MXU matmul on an O tile (bias folded into W)."""
    out_ref[...] = jnp.dot(
        xaug_ref[...], w_ref[...], preferred_element_type=jnp.float32
    ).astype(out_ref.dtype)


def convt_kernel(p_ref, w_ref, b_ref, out_ref, *, apply_relu):
    """One (bm, 4*Ci) @ (4*Ci, Co_pad) dot + bias (+ReLU) for one output parity."""
    y = jnp.dot(p_ref[...], w_ref[0], preferred_element_type=jnp.float32) + b_ref[0]
    if apply_relu:
        y = jnp.maximum(y, 0.0)
    out_ref[0] = y.astype(out_ref.dtype)


# ------------------------------ Pallas wrappers -----------------------------

def me_pallas(xaug_bf, waug_bf, *, o_tile):
    Bp, Ka = xaug_bf.shape
    _, Op = waug_bf.shape
    return pl.pallas_call(
        me_kernel,
        out_shape=jax.ShapeDtypeStruct((Bp, Op), jnp.bfloat16),
        grid=(Op // o_tile,),
        in_specs=[
            pl.BlockSpec((Bp, Ka), lambda j: (0, 0)),
            pl.BlockSpec((Ka, o_tile), lambda j: (0, j)),
        ],
        out_specs=pl.BlockSpec((Bp, o_tile), lambda j: (0, j)),
        compiler_params=pltpu.CompilerParams(
            dimension_semantics=("parallel",),
            vmem_limit_bytes=32 * 1024 * 1024),
    )(xaug_bf, waug_bf)


def convt_pallas(P, wq, bq, *, apply_relu, bm, out_dtype):
    Mp, K = P.shape
    _, _, Cop = wq.shape
    kernel = functools.partial(convt_kernel, apply_relu=apply_relu)
    return pl.pallas_call(
        kernel,
        out_shape=jax.ShapeDtypeStruct((4, Mp, Cop), out_dtype),
        grid=(Mp // bm, 4),                      # 4 parity steps -> >=2 parallel iters (v7x)
        in_specs=[
            pl.BlockSpec((bm, K), lambda i, q: (i, 0)),        # true K, no HBM zero-pad
            pl.BlockSpec((1, K, Cop), lambda i, q: (q, 0, 0)),
            pl.BlockSpec((1, 1, Cop), lambda i, q: (q, 0, 0)),
        ],
        out_specs=pl.BlockSpec((1, bm, Cop), lambda i, q: (q, i, 0)),
        compiler_params=pltpu.CompilerParams(
            dimension_semantics=("parallel", "parallel"),
            vmem_limit_bytes=32 * 1024 * 1024),
    )(P, wq, bq)


# --------------------------- parameters & prep ------------------------------

def init_params(key, channels, input_shape, z_dim, n_leaf):
    C0, H0, W0 = input_shape
    O = C0 * H0 * W0
    keys = jax.random.split(key, 2 + 2 * len(channels))
    gw = jax.random.normal(keys[0], (z_dim, n_leaf), jnp.float32) * np.sqrt(2.0 / (z_dim + n_leaf))
    gb = jnp.zeros((n_leaf,), jnp.float32)
    pw = jax.random.normal(keys[1], (O, z_dim, n_leaf), jnp.float32) * (1.0 / np.sqrt(z_dim))
    pb = jnp.zeros((O, n_leaf), jnp.float32)
    convs = []
    cur_c = C0
    for i, ch in enumerate(channels):
        w = jax.random.normal(keys[2 + 2 * i], (cur_c, ch, 4, 4), jnp.float32) * 0.05
        b = jax.random.normal(keys[3 + 2 * i], (ch,), jnp.float32) * 0.05
        convs.append((w, b))
        cur_c = ch
    return dict(gw=gw, gb=gb, pw=pw, pb=pb, convs=convs)


def _build_convt_weight_parity(w_torch, b, co_pad):
    """PyTorch ConvTranspose2d weight (Ci, Co, 4, 4) -> (4, 4*Ci, Co_pad) per-parity
    dense matmul weights, plus (4, 1, Co_pad) bias.

    Parity q = 2*ph + pw: output pixel (2*y + ph - 1, 2*x + pw - 1) for base (y, x)
    over the zero-padded input; window offset (a, b) uses tap (2+ph-2a, 2+pw-2b).
    """
    w = np.asarray(w_torch, np.float32)
    Ci, Co = w.shape[0], w.shape[1]
    wq = np.zeros((4, 4 * Ci, co_pad), np.float32)
    for ph in range(2):
        for pw_ in range(2):
            q = 2 * ph + pw_
            for a in range(2):
                for bb in range(2):
                    r = 2 * a + bb
                    kh = 2 + ph - 2 * a
                    kw = 2 + pw_ - 2 * bb
                    wq[q, r * Ci:(r + 1) * Ci, :Co] = w[:, :, kh, kw]
    bq = np.zeros((4, 1, co_pad), np.float32)
    bq[:, 0, :Co] = np.asarray(b, np.float32)[None, :]
    return jnp.asarray(wq).astype(jnp.bfloat16), jnp.asarray(bq)


def prepare_params(params, input_shape):
    """One-time host-side parameter preparation (hoisted out of the forward)."""
    C0, H0, W0 = input_shape
    z, L = params["gw"].shape
    O = params["pw"].shape[0]
    Op, o_tile = _pad_and_tile(O, 128, 512)

    # Augmented ME weight: rows = leaf-major flattened (l, i) of pw, then L bias rows.
    pw = np.asarray(params["pw"], np.float32)                 # (O, z, L), pw[o, i, l]
    pb = np.asarray(params["pb"], np.float32)                 # (O, L)
    w2 = pw.transpose(2, 1, 0).reshape(L * z, O)              # row (l*z+i) = pw[:, i, l]
    waug = np.concatenate([w2, pb.T], axis=0)                 # (L*z + L, O), cols CHW order
    # permute columns CHW -> HWC so me.reshape(B, H0, W0, C0) is directly NHWC
    waug = waug.reshape(-1, C0, H0, W0).transpose(0, 2, 3, 1).reshape(-1, O)
    waug = np.pad(waug, ((0, 0), (0, Op - O)))
    waug = jnp.asarray(waug).astype(jnp.bfloat16)

    convs = []
    for (w, b) in params["convs"]:
        Co = int(w.shape[1])
        co_pad = _round_up(Co, 128)
        wq, bq = _build_convt_weight_parity(w, b, co_pad)
        convs.append(dict(co=Co, wq=wq, bq=bq))

    return dict(gw=params["gw"].astype(jnp.float32),
                gb=params["gb"].astype(jnp.float32),
                waug=waug, o_dim=O, o_tile=o_tile, n_leaf=L, convs=convs)


# ----------------------------------- forward ---------------------------------

def mog_forward(x, prep, input_shape):
    """MOGBlock.forward: ME -> reshape -> [ConvT(4,2,1) + ReLU]* -> ConvT(4,2,1)."""
    C0, H0, W0 = input_shape
    B, z = x.shape
    L = prep["n_leaf"]
    O = prep["o_dim"]

    # Gating computed ONCE here (jitted, fuses) -- not per O tile inside the kernel.
    g = jax.nn.softmax(jnp.dot(x, prep["gw"]) + prep["gb"], axis=1)        # (B, L) f32
    xaug = jnp.concatenate([g[:, l:l + 1] * x for l in range(L)] + [g], axis=-1)
    Bp = _round_up(B, 16)                                                   # bf16 M packing
    xaug = jnp.pad(xaug, ((0, Bp - B), (0, 0))).astype(jnp.bfloat16)        # (Bp, L*z+L)

    me = me_pallas(xaug, prep["waug"], o_tile=prep["o_tile"])               # (Bp, Op) bf16
    h = me[:B, :O].reshape(B, H0, W0, C0)                                   # NHWC (col perm)

    n_layers = len(prep["convs"])
    for li, lp in enumerate(prep["convs"]):
        N, H, W, Ci = h.shape
        Co = lp["co"]
        last = li == n_layers - 1

        # im2col over the zero-padded input; K stays at its true 4*Ci (no HBM zero-pad).
        # TODO(synk): assemble these window slices inside the kernel from the padded
        # NHWC activation to avoid materializing the im2col matrix at large shapes.
        xp = jnp.pad(h, ((0, 0), (1, 1), (1, 1), (0, 0)))
        cols = [xp[:, a:a + H + 1, b:b + W + 1, :] for a in (0, 1) for b in (0, 1)]
        P = jnp.concatenate(cols, axis=-1).reshape(N * (H + 1) * (W + 1), 4 * Ci)
        M = P.shape[0]
        Mp, bm = _pad_and_tile(M, 16, 256)
        P = jnp.pad(P, ((0, Mp - M), (0, 0))).astype(jnp.bfloat16)

        Z = convt_pallas(P, lp["wq"], lp["bq"], apply_relu=not last, bm=bm,
                         out_dtype=jnp.float32 if last else jnp.bfloat16)   # (4, Mp, Cop)

        # un-parity interleave (jitted XLA) + center crop
        Zp = Z[:, :M, :Co].reshape(2, 2, N, H + 1, W + 1, Co)
        Y = Zp.transpose(2, 3, 0, 4, 1, 5).reshape(N, 2 * (H + 1), 2 * (W + 1), Co)
        h = Y[:, 1:2 * H + 1, 1:2 * W + 1, :]
    return jnp.transpose(h, (0, 3, 1, 2)).astype(jnp.float32)               # NCHW


# ------------------------------ numpy reference ------------------------------

def _ref_convt(x_nchw, w, bias):
    N, Ci, H, W = x_nchw.shape
    Co = w.shape[1]
    out = np.zeros((N, Co, 2 * H, 2 * W), np.float32) + bias[None, :, None, None]
    for ih in range(H):
        for iw in range(W):
            for kh in range(4):
                for kw in range(4):
                    oh = 2 * ih - 1 + kh
                    ow = 2 * iw - 1 + kw
                    if 0 <= oh < 2 * H and 0 <= ow < 2 * W:
                        out[:, :, oh, ow] += x_nchw[:, :, ih, iw] @ w[:, :, kh, kw]
    return out


def reference_forward(x, params, channels, input_shape):
    C0, H0, W0 = input_shape
    B = x.shape[0]
    gw, gb = np.asarray(params["gw"]), np.asarray(params["gb"])
    pw, pb = np.asarray(params["pw"]), np.asarray(params["pb"])
    logits = x @ gw + gb
    e = np.exp(logits - logits.max(axis=1, keepdims=True))
    g = e / e.sum(axis=1, keepdims=True)
    y = np.einsum("bi,oil->bol", x, pw) + pb[None]
    me_out = np.einsum("bol,bl->bo", y, g)
    h = me_out.reshape(B, C0, H0, W0).astype(np.float32)
    n_layers = len(channels)
    for li, (w, b) in enumerate(params["convs"]):
        h = _ref_convt(h, np.asarray(w), np.asarray(b))
        if li < n_layers - 1:
            h = np.maximum(h, 0.0)
    return h


# ----------------------------------- main ------------------------------------

if __name__ == "__main__":
    channels = [8, 3]          # ConvT(4->8) + ReLU + ConvT(8->3)
    input_shape = (4, 4, 4)    # (C0, H0, W0) -> ME out_features = 64
    z_dim = 8
    n_leaf = 4
    B = 2

    key = jax.random.PRNGKey(0)
    pkey, xkey = jax.random.split(key)
    params = init_params(pkey, channels, input_shape, z_dim, n_leaf)
    prep = prepare_params(params, input_shape)
    x = jax.random.normal(xkey, (B, z_dim), jnp.float32)

    fwd = jax.jit(functools.partial(mog_forward, prep=prep, input_shape=input_shape))
    out = jax.block_until_ready(fwd(x))                                    # (B, 3, 16, 16)

    ref = reference_forward(np.asarray(x), params, channels, input_shape)
    np.testing.assert_allclose(np.asarray(out), ref, rtol=2e-2, atol=2e-2)
    assert out.shape == (B, channels[-1], input_shape[1] * 4, input_shape[2] * 4)
    print("KERNEL_OK")
</pallas_src>

<mosaic_0001>
module attributes {stable_mosaic.version = 11 : i64} {
  func.func @me_kernel(%arg0: i32, %arg1: memref<16x36xbf16, #tpu.memory_space<vmem>>, %arg2: memref<36x128xbf16, #tpu.memory_space<vmem>>, %arg3: memref<16x128xbf16, #tpu.memory_space<vmem>>) attributes {dimension_semantics = [#tpu.dimension_semantics<parallel>], iteration_bounds = array<i64: 1>, scalar_prefetch = 0 : i64, scratch_operands = 0 : i64, tpu.core_type = #tpu.core_type<tc>, window_params = [{pipeline_mode = #tpu.pipeline_mode<synchronous>, transform_indices = @transform_0, window_bounds = array<i64: 16, 36>}, {transform_indices = @transform_1, window_bounds = array<i64: 36, 128>}, {transform_indices = @transform_2, window_bounds = array<i64: 16, 128>}]} {
    %c0 = arith.constant 0 : index
    %c0_0 = arith.constant 0 : index
    %0 = vector.load %arg1[%c0, %c0_0] : memref<16x36xbf16, #tpu.memory_space<vmem>>, vector<16x36xbf16>
    %c0_1 = arith.constant 0 : index
    %c0_2 = arith.constant 0 : index
    %1 = vector.load %arg2[%c0_1, %c0_2] : memref<36x128xbf16, #tpu.memory_space<vmem>>, vector<36x128xbf16>
    %cst = arith.constant dense<0.000000e+00> : vector<16x128xf32>
    %2 = tpu.matmul %0, %1, %cst {dimension_numbers = #tpu.dot_dimension_numbers<[1], [0], [0], [1], [0, 0, 1, 1], [], []>} : vector<16x36xbf16>, vector<36x128xbf16>, vector<16x128xf32> -> vector<16x128xf32>
    %3 = arith.truncf %2 : vector<16x128xf32> to vector<16x128xbf16>
    %c0_3 = arith.constant 0 : index
    %c0_4 = arith.constant 0 : index
    %4 = vector.load %arg3[%c0_3, %c0_4] : memref<16x128xbf16, #tpu.memory_space<vmem>>, vector<16x128xbf16>
    tpu.vector_store %arg3[%c0_3, %c0_4], %3 {strides = array<i32>} : memref<16x128xbf16, #tpu.memory_space<vmem>>, vector<16x128xbf16>,
    return
  }
  func.func @transform_0(%arg0: i32) -> (i32, i32) {
    %c0_i32 = arith.constant 0 : i32
    %c0_i32_0 = arith.constant 0 : i32
    %c0_i32_1 = arith.constant 0 : i32
    return %c0_i32, %c0_i32_0 : i32, i32
  }
  func.func @transform_1(%arg0: i32) -> (i32, i32) {
    %c0_i32 = arith.constant 0 : i32
    %c0_i32_0 = arith.constant 0 : i32
    return %c0_i32, %arg0 : i32, i32
  }
  func.func @transform_2(%arg0: i32) -> (i32, i32) {
    %c0_i32 = arith.constant 0 : i32
    %c0_i32_0 = arith.constant 0 : i32
    return %c0_i32, %arg0 : i32, i32
  }
}

module attributes {stable_mosaic.version = 11 : i64} {
  func.func @convt_kernel(%arg0: i32, %arg1: i32, %arg2: memref<64x16xbf16, #tpu.memory_space<vmem>>, %arg3: memref<1x16x128xbf16, #tpu.memory_space<vmem>>, %arg4: memref<1x1x128xf32, #tpu.memory_space<vmem>>, %arg5: memref<1x64x128xbf16, #tpu.memory_space<vmem>>) attributes {dimension_semantics = [#tpu.dimension_semantics<parallel>, #tpu.dimension_semantics<parallel>], iteration_bounds = array<i64: 1, 4>, scalar_prefetch = 0 : i64, scratch_operands = 0 : i64, tpu.core_type = #tpu.core_type<tc>, window_params = [{transform_indices = @transform_0, window_bounds = array<i64: 64, 16>}, {transform_indices = @transform_1, window_bounds = array<i64: 1, 16, 128>}, {transform_indices = @transform_2, window_bounds = array<i64: 1, 1, 128>}, {transform_indices = @transform_3, window_bounds = array<i64: 1, 64, 128>}]} {
    %c0 = arith.constant 0 : index
    %c0_0 = arith.constant 0 : index
    %0 = vector.load %arg2[%c0, %c0_0] : memref<64x16xbf16, #tpu.memory_space<vmem>>, vector<64x16xbf16>
    %c0_1 = arith.constant 0 : index
    %c0_2 = arith.constant 0 : index
    %c0_3 = arith.constant 0 : index
    %1 = vector.load %arg3[%c0_1, %c0_2, %c0_3] : memref<1x16x128xbf16, #tpu.memory_space<vmem>>, vector<1x16x128xbf16>
    %2 = vector.shape_cast %1 : vector<1x16x128xbf16> to vector<16x128xbf16>
    %cst = arith.constant dense<0.000000e+00> : vector<64x128xf32>
    %3 = tpu.matmul %0, %2, %cst {dimension_numbers = #tpu.dot_dimension_numbers<[1], [0], [0], [1], [0, 0, 1, 1], [], []>} : vector<64x16xbf16>, vector<16x128xbf16>, vector<64x128xf32> -> vector<64x128xf32>
    %c0_4 = arith.constant 0 : index
    %c0_5 = arith.constant 0 : index
    %c0_6 = arith.constant 0 : index
    %4 = vector.load %arg4[%c0_4, %c0_5, %c0_6] : memref<1x1x128xf32, #tpu.memory_space<vmem>>, vector<1x1x128xf32>
    %5 = vector.shape_cast %4 : vector<1x1x128xf32> to vector<1x128xf32>
    %6 = vector.broadcast %5 : vector<1x128xf32> to vector<64x128xf32>
    %7 = arith.addf %3, %6 : vector<64x128xf32>
    %cst_7 = arith.constant 0.000000e+00 : f32
    %8 = vector.broadcast %cst_7 : f32 to vector<64x128xf32>
    %9 = arith.maximumf %7, %8 : vector<64x128xf32>
    %10 = arith.truncf %9 : vector<64x128xf32> to vector<64x128xbf16>
    %c0_8 = arith.constant 0 : index
    %c0_9 = arith.constant 0 : index
    %c0_10 = arith.constant 0 : index
    %11 = vector.load %arg5[%c0_8, %c0_9, %c0_10] : memref<1x64x128xbf16, #tpu.memory_space<vmem>>, vector<1x64x128xbf16>
    %12 = vector.shape_cast %11 : vector<1x64x128xbf16> to vector<64x128xbf16>
    %13 = vector.shape_cast %10 : vector<64x128xbf16> to vector<1x64x128xbf16>
    tpu.vector_store %arg5[%c0_8, %c0_9, %c0_10], %13 {strides = array<i32>} : memref<1x64x128xbf16, #tpu.memory_space<vmem>>, vector<1x64x128xbf16>,
    return
  }
  func.func @transform_0(%arg0: i32, %arg1: i32) -> (i32, i32) {
    %c0_i32 = arith.constant 0 : i32
    %c0_i32_0 = arith.constant 0 : i32
    return %arg0, %c0_i32 : i32, i32
  }
  func.func @transform_1(%arg0: i32, %arg1: i32) -> (i32, i32, i32) {
    %c0_i32 = arith.constant 0 : i32
    %c0_i32_0 = arith.constant 0 : i32
    %c0_i32_1 = arith.constant 0 : i32
    return %arg1, %c0_i32, %c0_i32_0 : i32, i32, i32
  }
  func.func @transform_2(%arg0: i32, %arg1: i32) -> (i32, i32, i32) {
    %c0_i32 = arith.constant 0 : i32
    %c0_i32_0 = arith.constant 0 : i32
    %c0_i32_1 = arith.constant 0 : i32
    return %arg1, %c0_i32, %c0_i32_0 : i32, i32, i32
  }
  func.func @transform_3(%arg0: i32, %arg1: i32) -> (i32, i32, i32) {
    %c0_i32 = arith.constant 0 : i32
    %c0_i32_0 = arith.constant 0 : i32
    return %arg1, %arg0, %c0_i32 : i32, i32, i32
  }
}

module attributes {stable_mosaic.version = 11 : i64} {
  func.func @convt_kernel(%arg0: i32, %arg1: i32, %arg2: memref<176x32xbf16, #tpu.memory_space<vmem>>, %arg3: memref<1x32x128xbf16, #tpu.memory_space<vmem>>, %arg4: memref<1x1x128xf32, #tpu.memory_space<vmem>>, %arg5: memref<1x176x128xf32, #tpu.memory_space<vmem>>) attributes {dimension_semantics = [#tpu.dimension_semantics<parallel>, #tpu.dimension_semantics<parallel>], iteration_bounds = array<i64: 1, 4>, scalar_prefetch = 0 : i64, scratch_operands = 0 : i64, tpu.core_type = #tpu.core_type<tc>, window_params = [{transform_indices = @transform_0, window_bounds = array<i64: 176, 32>}, {transform_indices = @transform_1, window_bounds = array<i64: 1, 32, 128>}, {transform_indices = @transform_2, window_bounds = array<i64: 1, 1, 128>}, {transform_indices = @transform_3, window_bounds = array<i64: 1, 176, 128>}]} {
    %c0 = arith.constant 0 : index
    %c0_0 = arith.constant 0 : index
    %0 = vector.load %arg2[%c0, %c0_0] : memref<176x32xbf16, #tpu.memory_space<vmem>>, vector<176x32xbf16>
    %c0_1 = arith.constant 0 : index
    %c0_2 = arith.constant 0 : index
    %c0_3 = arith.constant 0 : index
    %1 = vector.load %arg3[%c0_1, %c0_2, %c0_3] : memref<1x32x128xbf16, #tpu.memory_space<vmem>>, vector<1x32x128xbf16>
    %2 = vector.shape_cast %1 : vector<1x32x128xbf16> to vector<32x128xbf16>
    %cst = arith.constant dense<0.000000e+00> : vector<176x128xf32>
    %3 = tpu.matmul %0, %2, %cst {dimension_numbers = #tpu.dot_dimension_numbers<[1], [0], [0], [1], [0, 0, 1, 1], [], []>} : vector<176x32xbf16>, vector<32x128xbf16>, vector<176x128xf32> -> vector<176x128xf32>
    %c0_4 = arith.constant 0 : index
    %c0_5 = arith.constant 0 : index
    %c0_6 = arith.constant 0 : index
    %4 = vector.load %arg4[%c0_4, %c0_5, %c0_6] : memref<1x1x128xf32, #tpu.memory_space<vmem>>, vector<1x1x128xf32>
    %5 = vector.shape_cast %4 : vector<1x1x128xf32> to vector<1x128xf32>
    %6 = vector.broadcast %5 : vector<1x128xf32> to vector<176x128xf32>
    %7 = arith.addf %3, %6 : vector<176x128xf32>
    %c0_7 = arith.constant 0 : index
    %c0_8 = arith.constant 0 : index
    %c0_9 = arith.constant 0 : index
    %8 = vector.load %arg5[%c0_7, %c0_8, %c0_9] : memref<1x176x128xf32, #tpu.memory_space<vmem>>, vector<1x176x128xf32>
    %9 = vector.shape_cast %8 : vector<1x176x128xf32> to vector<176x128xf32>
    %10 = vector.shape_cast %7 : vector<176x128xf32> to vector<1x176x128xf32>
    tpu.vector_store %arg5[%c0_7, %c0_8, %c0_9], %10 {strides = array<i32>} : memref<1x176x128xf32, #tpu.memory_space<vmem>>, vector<1x176x128xf32>,
    return
  }
  func.func @transform_0(%arg0: i32, %arg1: i32) -> (i32, i32) {
    %c0_i32 = arith.constant 0 : i32
    %c0_i32_0 = arith.constant 0 : i32
    return %arg0, %c0_i32 : i32, i32
  }
  func.func @transform_1(%arg0: i32, %arg1: i32) -> (i32, i32, i32) {
    %c0_i32 = arith.constant 0 : i32
    %c0_i32_0 = arith.constant 0 : i32
    %c0_i32_1 = arith.constant 0 : i32
    return %arg1, %c0_i32, %c0_i32_0 : i32, i32, i32
  }
  func.func @transform_2(%arg0: i32, %arg1: i32) -> (i32, i32, i32) {
    %c0_i32 = arith.constant 0 : i32
    %c0_i32_0 = arith.constant 0 : i32
    %c0_i32_1 = arith.constant 0 : i32
    return %arg1, %c0_i32, %c0_i32_0 : i32, i32, i32
  }
  func.func @transform_3(%arg0: i32, %arg1: i32) -> (i32, i32, i32) {
    %c0_i32 = arith.constant 0 : i32
    %c0_i32_0 = arith.constant 0 : i32
    return %arg1, %arg0, %c0_i32 : i32, i32, i32
  }
}

</mosaic_0001>

<bundles_post_ra>
// kernel: mog_forward.4
= control target key start
LH: loop header
LB: loop body
LE: loop exit
PB: predicated region body
PF: predicated region fallthrough
CT: control target
= control target key end

     0   :  { %s658_s12 = smov 0   ;;  %s660_s13 = smov 0   ;;  %s711_s0 = inlined_call_operand.vmem [shape: bf16[64,16], index: 0, kind: input, shape index: {}]   ;;  %s712_s1 = inlined_call_operand.vmem [shape: bf16[4,16,128], index: 1, kind: input, shape index: {}]   ;;  %s713_s2 = inlined_call_operand.vmem [shape: f32[4,1,128], index: 2, kind: input, shape index: {}]   ;;  %s714_s3 = inlined_call_operand.vmem [shape: bf16[4,64,128], index: 3, kind: output, shape index: {}]  }
   0x1   :  { %s662_s14 = smov 0  }
   0x2 LB: > { %s22_s15 = sadd.s32 1, %s632_s13  ;;  %p510_p0 = scmp.ge.s32.totalorder %s636_s14, 1  ;;  %s636_s14 = sphi %s662_s14, %s13_s14   ;;  %s632_s13 = sphi %s660_s13, %s716_s13   ;;  %s628_s12 = sphi %s658_s12, %s715_s12  }
   0x3   : > { %p23_p1 = scmp.ge.s32.totalorder %s22_s15, 4  ;;  %p170_p2 = scmp.lt.s32.totalorder %s636_s14, 5 }
   0x5   : > { %s718_s15 = smov (%p23_p1, %s22_s15), 0  ;;  %p171_p3 = pnand %p510_p0, %p170_p2 }
   0x6   : > { %p212_p4 = scmp.lt.s32.totalorder (!%p171_p3), %s628_s12, 3  ;;  %v610_v0 = vld [vmem:[%s711_s0] sm:$0xff] (!%p171_p3)   ;;  %vm274_vm0 = vcmask (!%p171_p3), 130048   ;;  %v611_v1 = vld [vmem:[%s711_s0 + $0x10] sm:$0xff] (!%p171_p3)   ;;  %v612_v3 = vld [vmem:[%s711_s0 + $0x8] sm:$0xff] (!%p171_p3)  }
   0x7   : > { %174 = sbr.rel (%p171_p3) target bundleno = 244 (0xf4), region = 32  ;;  %575 = vmatprep.mubr.msk.bf16.mxu0 (!%p171_p3), %vm274_vm0, %v610_v0  ;;  %579 = vmatprep.mubr.msk.bf16.mxu1 (!%p171_p3), %vm274_vm0, %v611_v1  ;;  %v613_v4 = vld [vmem:[%s711_s0 + $0x18] sm:$0xff] (!%p171_p3)  }
   0xe   : > { %s720_s12 = smov (!%p212_p4, %s628_s12), 3 }
   0xf   : > { %s535_s20 = sshll.u32 %s720_s12, 3  ;;  %s219_s30 = scalar_lea.vmem %s713_s2, %s720_s12 }
  0x10   : > { %s216_s23 = scalar_lea.vmem %s712_s1, %s535_s20  ;;  %v515_v5 = vld [vmem:[%s219_s30] ss:$0 sm:$0xff]  ;;  %s536_s4 = sshll.u32 %s720_s12, 5 }
  0x11   : > { %v609_v2 = vld [vmem:[%s216_s23] sm:$0xff]   ;;  %s228_s7 = scalar_lea.vmem %s714_s3, %s536_s4 }
  0x12   : > { %573 = vmatprep.subr.bf16.mxu0 %v609_v2  ;;  %583 = vmatprep.subr.bf16.mxu1 %v609_v2 }
  0x13   : > { %574 = vmatpush3.bf16.msra.mxu0 %v609_v2  ;;  %584 = vmatpush3.bf16.msra.mxu1 %v609_v2 }
  0x16   : > { %576 = vmatmul.mubr.msk.bf16.vlgmr.msra.gmra.mrb[0].mxu0 %vm274_vm0, %v612_v3  ;;  %580 = vmatmul.mubr.msk.bf16.vlgmr.msra.gmra.mrb[0].mxu1 %vm274_vm0, %v613_v4 }
  0xe9   : > { %v577_v6 = vpop.f32.mrb[0].mxu0  ;;  %v581_v7 = vpop.f32.mrb[0].mxu1 }
  0xea   : > { %v330_v8 = vadd.f32 %v577_v6, %v515_v5  ;;  %v346_v9 = vadd.f32 %v581_v7, %v515_v5  ;;  %v321_v10 = vpop.f32.mrb[1].mxu0  ;;  %v337_v11 = vpop.f32.mrb[1].mxu1 }
  0xeb   : > { %v322_v12 = vadd.f32 %v515_v5, %v321_v10  ;;  %v338_v13 = vadd.f32 %v515_v5, %v337_v11  ;;  %v578_v14 = vpop.f32.mrb[2].mxu0  ;;  %v582_v15 = vpop.f32.mrb[2].mxu1 }
  0xec   : > { %v333_v16 = vadd.f32 %v578_v14, %v515_v5  ;;  %v349_v17 = vadd.f32 %v582_v15, %v515_v5  ;;  %v324_v18 = vpop.f32.mrb[3].mxu0  ;;  %v340_v19 = vpop.f32.mrb[3].mxu1  ;;  %v354_v22 = vmax.f32 %v330_v8, 0.0  ;;  %v358_v23 = vmax.f32 %v346_v9, 0.0 }
  0xed   : > { %v325_v20 = vadd.f32 %v515_v5, %v324_v18  ;;  %v341_v21 = vadd.f32 %v515_v5, %v340_v19  ;;  %v352_v26 = vmax.f32 %v322_v12, 0.0  ;;  %v356_v27 = vmax.f32 %v338_v13, 0.0 }
  0xee   : > { %v355_v24 = vmax.f32 %v333_v16, 0.0  ;;  %v359_v25 = vmax.f32 %v349_v17, 0.0 }
  0xef   : > { %v353_v28 = vmax.f32 %v325_v20, 0.0  ;;  %v357_v29 = vmax.f32 %v341_v21, 0.0 }
  0xf0   : > { %v553_v30 = vpack.c.bf16 %v355_v24, %v354_v22  ;;  %v563_v31 = vpack.c.bf16 %v359_v25, %v358_v23 }
  0xf1   : > { %v548_v32 = vpack.c.bf16 %v353_v28, %v352_v26  ;;  %v558_v33 = vpack.c.bf16 %v357_v29, %v356_v27 }
  0xf2   : > { %565 = vst [vmem:[%s228_s7 + $0x8] sm:$0xff] %v553_v30   ;;  %567 = vst [vmem:[%s228_s7 + $0x18] sm:$0xff] %v563_v31  }
  0xf3   : > { %549 = vst [vmem:[%s228_s7] sm:$0xff] %v548_v32   ;;  %566 = vst [vmem:[%s228_s7 + $0x10] sm:$0xff] %v558_v33  }
  0xf4 PF: > { %s13_s14 = sadd.s32 1, %s636_s14   ;;  %s715_s12 = smov %s632_s13 }
  0xf5   : > { %p10_p5 = scmp.ge.s32.totalorder %s13_s14, 6   ;;  %s716_s13 = smov %s718_s15 }
  0xf7   :  { %12 = sbr.rel (!%p10_p5) target bundleno = 2 (0x2), region = 68 }

// kernel: mog_forward.3
= control target key start
LH: loop header
LB: loop body
LE: loop exit
PB: predicated region body
PF: predicated region fallthrough
CT: control target
= control target key end

     0   :  { %v136_v0 = vmov 0.0   ;;  %vm137_vm0 = vmmov 0   ;;  %vm43_vm1 = vcmask 1041408   ;;  %vm39_vm2 = vcmask 293888   ;;  %s168_s1 = inlined_call_operand.vmem [shape: bf16[36,128], index: 1, kind: input, shape index: {}]   ;;  %s169_s0 = inlined_call_operand.vmem [shape: bf16[16,36], index: 0, kind: input, shape index: {}]   ;;  %s170_s2 = inlined_call_operand.vmem [shape: bf16[16,128], index: 2, kind: output, shape index: {}]  }
   0x1   :  { %120 = vmatprep.subr.bf16.mxu0 %v136_v0  ;;  %v132_v1 = vld [vmem:[%s168_s1] sm:$0xff]   ;;  %126 = vmatprep.mubr.msk.bf16.mxu0 %vm137_vm0, %v136_v0  ;;  %v133_v2 = vld [vmem:[%s168_s1 + $0x8] sm:$0xff]   ;;  %v134_v3 = vld [vmem:[%s168_s1 + $0x10] ss:$0 sps:$4 sm:$0x33]  }
   0x2   :  { %121 = vmatpush3.bf16.msra.mxu0 %v132_v1  ;;  %v45_v4 = vsel %vm43_vm1, %v134_v3, 0  ;;  %v135_v5 = vld [vmem:[%s169_s0] sm:$0xff]  }
   0x3   :  { %122 = vmatprep.subr.bf16.mxu0 %v136_v0 }
   0x6   :  { %123 = vmatpush3.bf16.msra.mxu0 %v133_v2 }
   0x7   :  { %124 = vmatprep.subr.bf16.mxu0 %v136_v0 }
   0xa   :  { %125 = vmatpush3.bf16.msra.mxu0 %v45_v4 }
   0xd   :  { %127 = vmatmul.mubr.msk.bf16.vlgmr.msra.gmra.mrb[0].mxu0 %vm39_vm2, %v135_v5 }
  0xe0   :  { %v81_v6 = vpop.f32.mrb[0].mxu0 }
  0xe1   :  { %v128_v7 = vpop.f32.mrb[1].mxu0 }
  0xe2   :  { %v84_v8 = vpop.f32.mrb[2].mxu0 }
  0xe3   :  { %v114_v9 = vpack.c.bf16 %v84_v8, %v81_v6  ;;  %v129_v10 = vpop.f32.mrb[3].mxu0 }
  0xe5   :  { %115 = vst [vmem:[%s170_s2] sm:$0xff] %v114_v9  }

// kernel: mog_forward.5
= control target key start
LH: loop header
LB: loop body
LE: loop exit
PB: predicated region body
PF: predicated region fallthrough
CT: control target
= control target key end

     0   :  { %s801_s12 = smov 0   ;;  %s803_s13 = smov 0   ;;  %s945_s0 = inlined_call_operand.vmem [shape: bf16[176,32], index: 0, kind: input, shape index: {}]   ;;  %s946_s1 = inlined_call_operand.vmem [shape: bf16[4,32,128], index: 1, kind: input, shape index: {}]   ;;  %s947_s2 = inlined_call_operand.vmem [shape: f32[4,1,128], index: 2, kind: input, shape index: {}]   ;;  %s948_s3 = inlined_call_operand.vmem [shape: f32[4,176,128], index: 3, kind: output, shape index: {}]  }
   0x1   :  { %s805_s14 = smov 0  }
   0x2 LB: > { %s22_s15 = sadd.s32 1, %s773_s13  ;;  %p618_p0 = scmp.ge.s32.totalorder %s777_s14, 1  ;;  %s777_s14 = sphi %s805_s14, %s13_s14   ;;  %s773_s13 = sphi %s803_s13, %s950_s13   ;;  %s769_s12 = sphi %s801_s12, %s949_s12  }
   0x3   : > { %p23_p1 = scmp.ge.s32.totalorder %s22_s15, 4  ;;  %p170_p2 = scmp.lt.s32.totalorder %s777_s14, 5 }
   0x5   : > { %s952_s15 = smov (%p23_p1, %s22_s15), 0  ;;  %p171_p3 = pnand %p618_p0, %p170_p2 }
   0x6   : > { %p212_p4 = scmp.lt.s32.totalorder (!%p171_p3), %s769_s12, 3  ;;  %v779_v0 = vmov (!%p171_p3), 0.0   ;;  %vm780_vm0 = vmmov (!%p171_p3), 0   ;;  %v744_v3 = vld [vmem:[%s945_s0] sm:$0xff] (!%p171_p3)   ;;  %v745_v4 = vld [vmem:[%s945_s0 + $0x30] sm:$0xff] (!%p171_p3)   ;;  %vm331_vm1 = vcmask (!%p171_p3), 261120  }
   0x7   : > { %174 = sbr.rel (%p171_p3) target bundleno = 282 (0x11a), region = 32  ;;  %663 = vmatprep.subr.bf16.mxu0 (!%p171_p3), %v779_v0  ;;  %711 = vmatprep.subr.bf16.mxu1 (!%p171_p3), %v779_v0  ;;  %v746_v5 = vld [vmem:[%s945_s0 + $0x8] sm:$0xff] (!%p171_p3)   ;;  %v747_v6 = vld [vmem:[%s945_s0 + $0x38] sm:$0xff] (!%p171_p3)   ;;  %v748_v7 = vld [vmem:[%s945_s0 + $0x10] sm:$0xff] (!%p171_p3)  }
   0x8   : > { %667 = vmatprep.mubr.msk.bf16.mxu0 (!%p171_p3), %vm780_vm0, %v779_v0  ;;  %691 = vmatprep.mubr.msk.bf16.mxu1 (!%p171_p3), %vm780_vm0, %v779_v0  ;;  %v749_v8 = vld [vmem:[%s945_s0 + $0x40] sm:$0xff] (!%p171_p3)   ;;  %v750_v9 = vld [vmem:[%s945_s0 + $0x18] sm:$0xff] (!%p171_p3)   ;;  %v751_v10 = vld [vmem:[%s945_s0 + $0x48] sm:$0xff] (!%p171_p3)  }
   0x9   : > { %v752_v11 = vld [vmem:[%s945_s0 + $0x20] sm:$0xff] (!%p171_p3)   ;;  %v753_v12 = vld [vmem:[%s945_s0 + $0x50] sm:$0xff] (!%p171_p3)   ;;  %v754_v13 = vld [vmem:[%s945_s0 + $0x28] sm:$0xff] (!%p171_p3)  }
   0xe   : > { %s954_s12 = smov (!%p212_p4, %s769_s12), 3 }
   0xf   : > { %s649_s16 = sshll.u32 %s954_s12, 4  ;;  %s219_s21 = scalar_lea.vmem %s947_s2, %s954_s12 }
  0x10   : > { %s216_s19 = scalar_lea.vmem %s946_s1, %s649_s16  ;;  %s715_s22 = smul.u32 176, %s954_s12  ;;  %v885_v14 = vld [vmem:[%s219_s21] ss:$0 sm:$0xff] }
  0x11   : > { %v742_v1 = vld [vmem:[%s216_s19] sm:$0xff]   ;;  %v743_v2 = vld [vmem:[%s216_s19 + $0x8] sm:$0xff]  }
  0x12   : > { %664 = vmatpush3.bf16.msra.mxu0 %v742_v1  ;;  %713 = vmatpush3.bf16.msra.mxu1 %v742_v1  ;;  %s890_s25 = scalar_lea.vmem %s948_s3, %s715_s22 }
  0x13   : > { %665 = vmatprep.subr.bf16.mxu0 %v779_v0  ;;  %712 = vmatprep.subr.bf16.mxu1 %v779_v0 }
  0x16   : > { %666 = vmatpush3.bf16.msra.mxu0 %v743_v2  ;;  %714 = vmatpush3.bf16.msra.mxu1 %v743_v2 }
  0x19   : > { %668 = vmatmul.mubr.msk.bf16.vlgmr.msra.gmra.mrb[0].mxu0 %vm331_vm1, %v744_v3  ;;  %692 = vmatmul.mubr.msk.bf16.vlgmr.msra.gmra.mrb[0].mxu1 %vm331_vm1, %v745_v4 }
  0x1a   : > { %671 = vmatprep.mubr.msk.bf16.mxu0 %vm780_vm0, %v779_v0  ;;  %695 = vmatprep.mubr.msk.bf16.mxu1 %vm780_vm0, %v779_v0 }
  0x21   : > { %672 = vmatmul.mubr.msk.bf16.gmra.mrb[4].mxu0 %vm331_vm1, %v746_v5  ;;  %696 = vmatmul.mubr.msk.bf16.gmra.mrb[4].mxu1 %vm331_vm1, %v747_v6 }
  0x22   : > { %675 = vmatprep.mubr.msk.bf16.mxu0 %vm780_vm0, %v779_v0  ;;  %699 = vmatprep.mubr.msk.bf16.mxu1 %vm780_vm0, %v779_v0 }
  0x29   : > { %676 = vmatmul.mubr.msk.bf16.gmra.mrb[8].mxu0 %vm331_vm1, %v748_v7  ;;  %700 = vmatmul.mubr.msk.bf16.gmra.mrb[8].mxu1 %vm331_vm1, %v749_v8 }
  0x2a   : > { %679 = vmatprep.mubr.msk.bf16.mxu0 %vm780_vm0, %v779_v0  ;;  %703 = vmatprep.mubr.msk.bf16.mxu1 %vm780_vm0, %v779_v0 }
  0x31   : > { %680 = vmatmul.mubr.msk.bf16.gmra.mrb[12].mxu0 %vm331_vm1, %v750_v9  ;;  %704 = vmatmul.mubr.msk.bf16.gmra.mrb[12].mxu1 %vm331_vm1, %v751_v10 }
  0x32   : > { %683 = vmatprep.mubr.msk.bf16.mxu0 %vm780_vm0, %v779_v0  ;;  %707 = vmatprep.mubr.msk.bf16.mxu1 %vm780_vm0, %v779_v0 }
  0x39   : > { %684 = vmatmul.mubr.msk.bf16.gmra.mrb[16].mxu0 %vm331_vm1, %v752_v11  ;;  %708 = vmatmul.mubr.msk.bf16.gmra.mrb[16].mxu1 %vm331_vm1, %v753_v12 }
  0x3a   : > { %687 = vmatprep.mubr.msk.bf16.mxu0 %vm780_vm0, %v779_v0 }
  0x41   : > { %688 = vmatmul.mubr.msk.bf16.gmra.mrb[20].mxu0 %vm331_vm1, %v754_v13 }
  0xec   : > { %v399_v15 = vpop.f32.mrb[0].mxu0  ;;  %v447_v16 = vpop.f32.mrb[0].mxu1 }
  0xed   : > { %v400_v17 = vadd.f32 %v885_v14, %v399_v15  ;;  %v669_v18 = vpop.f32.mrb[1].mxu0  ;;  %v448_v19 = vadd.f32 %v885_v14, %v447_v16  ;;  %v693_v20 = vpop.f32.mrb[1].mxu1 }
  0xee   : > { %v402_v21 = vpop.f32.mrb[2].mxu0  ;;  %v450_v22 = vpop.f32.mrb[2].mxu1 }
  0xef   : > { %486 = vst [vmem:[%s890_s25] sm:$0xff] %v400_v17  ;;  %v403_v23 = vadd.f32 %v885_v14, %v402_v21  ;;  %v670_v24 = vpop.f32.mrb[3].mxu0  ;;  %498 = vst [vmem:[%s890_s25 + $0x60] sm:$0xff] %v448_v19  ;;  %v451_v25 = vadd.f32 %v885_v14, %v450_v22  ;;  %v694_v26 = vpop.f32.mrb[3].mxu1 }
  0xf1   : > { %487 = vst [vmem:[%s890_s25 + $0x8] sm:$0xff] %v403_v23  ;;  %499 = vst [vmem:[%s890_s25 + $0x68] sm:$0xff] %v451_v25 }
  0xf4   : > { %v407_v27 = vpop.f32.mrb[4].mxu0  ;;  %v455_v28 = vpop.f32.mrb[4].mxu1 }
  0xf5   : > { %v408_v29 = vadd.f32 %v885_v14, %v407_v27  ;;  %v673_v30 = vpop.f32.mrb[5].mxu0  ;;  %v456_v31 = vadd.f32 %v885_v14, %v455_v28  ;;  %v697_v32 = vpop.f32.mrb[5].mxu1 }
  0xf6   : > { %v410_v33 = vpop.f32.mrb[6].mxu0  ;;  %v458_v34 = vpop.f32.mrb[6].mxu1 }
  0xf7   : > { %488 = vst [vmem:[%s890_s25 + $0x10] sm:$0xff] %v408_v29  ;;  %v411_v35 = vadd.f32 %v885_v14, %v410_v33  ;;  %v674_v36 = vpop.f32.mrb[7].mxu0  ;;  %500 = vst [vmem:[%s890_s25 + $0x70] sm:$0xff] %v456_v31  ;;  %v459_v37 = vadd.f32 %v885_v14, %v458_v34  ;;  %v698_v38 = vpop.f32.mrb[7].mxu1 }
  0xf9   : > { %489 = vst [vmem:[%s890_s25 + $0x18] sm:$0xff] %v411_v35  ;;  %501 = vst [vmem:[%s890_s25 + $0x78] sm:$0xff] %v459_v37 }
  0xfc   : > { %v415_v39 = vpop.f32.mrb[8].mxu0  ;;  %v463_v40 = vpop.f32.mrb[8].mxu1 }
  0xfd   : > { %v416_v41 = vadd.f32 %v885_v14, %v415_v39  ;;  %v677_v42 = vpop.f32.mrb[9].mxu0  ;;  %v464_v43 = vadd.f32 %v885_v14, %v463_v40  ;;  %v701_v44 = vpop.f32.mrb[9].mxu1 }
  0xfe   : > { %v418_v45 = vpop.f32.mrb[10].mxu0  ;;  %v466_v46 = vpop.f32.mrb[10].mxu1 }
  0xff   : > { %490 = vst [vmem:[%s890_s25 + $0x20] sm:$0xff] %v416_v41  ;;  %v419_v47 = vadd.f32 %v885_v14, %v418_v45  ;;  %v678_v48 = vpop.f32.mrb[11].mxu0  ;;  %502 = vst [vmem:[%s890_s25 + $0x80] sm:$0xff] %v464_v43  ;;  %v467_v49 = vadd.f32 %v885_v14, %v466_v46  ;;  %v702_v50 = vpop.f32.mrb[11].mxu1 }
 0x101   : > { %491 = vst [vmem:[%s890_s25 + $0x28] sm:$0xff] %v419_v47  ;;  %503 = vst [vmem:[%s890_s25 + $0x88] sm:$0xff] %v467_v49 }
 0x104   : > { %v423_v51 = vpop.f32.mrb[12].mxu0  ;;  %v471_v52 = vpop.f32.mrb[12].mxu1 }
 0x105   : > { %v424_v53 = vadd.f32 %v885_v14, %v423_v51  ;;  %v681_v54 = vpop.f32.mrb[13].mxu0  ;;  %v472_v55 = vadd.f32 %v885_v14, %v471_v52  ;;  %v705_v56 = vpop.f32.mrb[13].mxu1 }
 0x106   : > { %v426_v57 = vpop.f32.mrb[14].mxu0  ;;  %v474_v58 = vpop.f32.mrb[14].mxu1 }
 0x107   : > { %492 = vst [vmem:[%s890_s25 + $0x30] sm:$0xff] %v424_v53  ;;  %v427_v59 = vadd.f32 %v885_v14, %v426_v57  ;;  %v682_v60 = vpop.f32.mrb[15].mxu0  ;;  %504 = vst [vmem:[%s890_s25 + $0x90] sm:$0xff] %v472_v55  ;;  %v475_v61 = vadd.f32 %v885_v14, %v474_v58  ;;  %v706_v62 = vpop.f32.mrb[15].mxu1 }
 0x109   : > { %493 = vst [vmem:[%s890_s25 + $0x38] sm:$0xff] %v427_v59  ;;  %505 = vst [vmem:[%s890_s25 + $0x98] sm:$0xff] %v475_v61 }
 0x10c   : > { %v431_v63 = vpop.f32.mrb[16].mxu0  ;;  %v479_v0 = vpop.f32.mrb[16].mxu1 }
 0x10d   : > { %v432_v1 = vadd.f32 %v885_v14, %v431_v63  ;;  %v685_v2 = vpop.f32.mrb[17].mxu0  ;;  %v480_v3 = vadd.f32 %v885_v14, %v479_v0  ;;  %v709_v4 = vpop.f32.mrb[17].mxu1 }
 0x10e   : > { %v434_v5 = vpop.f32.mrb[18].mxu0  ;;  %v482_v6 = vpop.f32.mrb[18].mxu1 }
 0x10f   : > { %494 = vst [vmem:[%s890_s25 + $0x40] sm:$0xff] %v432_v1  ;;  %v435_v7 = vadd.f32 %v885_v14, %v434_v5  ;;  %v686_v8 = vpop.f32.mrb[19].mxu0  ;;  %506 = vst [vmem:[%s890_s25 + $0xa0] sm:$0xff] %v480_v3  ;;  %v483_v9 = vadd.f32 %v885_v14, %v482_v6  ;;  %v710_v10 = vpop.f32.mrb[19].mxu1 }
 0x111   : > { %495 = vst [vmem:[%s890_s25 + $0x48] sm:$0xff] %v435_v7  ;;  %507 = vst [vmem:[%s890_s25 + $0xa8] sm:$0xff] %v483_v9 }
 0x114   : > { %v439_v11 = vpop.f32.mrb[20].mxu0 }
 0x115   : > { %v440_v12 = vadd.f32 %v885_v14, %v439_v11  ;;  %v689_v13 = vpop.f32.mrb[21].mxu0 }
 0x116   : > { %v442_v15 = vpop.f32.mrb[22].mxu0 }
 0x117   : > { %496 = vst [vmem:[%s890_s25 + $0x50] sm:$0xff] %v440_v12  ;;  %v443_v16 = vadd.f32 %v885_v14, %v442_v15  ;;  %v690_v17 = vpop.f32.mrb[23].mxu0 }
 0x119   : > { %497 = vst [vmem:[%s890_s25 + $0x58] sm:$0xff] %v443_v16 }
 0x11a PF: > { %s13_s14 = sadd.s32 1, %s777_s14   ;;  %s949_s12 = smov %s773_s13 }
 0x11b   : > { %p10_p5 = scmp.ge.s32.totalorder %s13_s14, 6   ;;  %s950_s13 = smov %s952_s15 }
 0x11d   :  { %12 = sbr.rel (!%p10_p5) target bundleno = 2 (0x2), region = 68 }

</bundles_post_ra>
